<compile_context>
chip_gen: v7x
topology: tpu7x:2x2x1
jax: 0.10.0
libtpu: 0.0.40
codegen_flags: <defaults>
</compile_context>

<pallas_src>
import functools
import math

import jax
import jax.numpy as jnp
from jax.experimental import pallas as pl
from jax.experimental.pallas import tpu as pltpu

_VMEM_LIMIT_FALLBACK = 48 * 1024 * 1024  # safe on every generation (v7x = 64 MiB)
_vmem_limit_cache = None


def _vmem_limit_bytes():
    """~75% of physical VMEM: ~96 MiB on v5e/v6e (128 MiB), ~48 MiB on v7x (64 MiB)."""
    global _vmem_limit_cache
    if _vmem_limit_cache is None:
        try:
            cap = pltpu.get_tpu_info().vmem_capacity_bytes
            _vmem_limit_cache = int(cap * 3 // 4)
        except Exception:  # pragma: no cover - conservative fallback
            _vmem_limit_cache = _VMEM_LIMIT_FALLBACK
    return _vmem_limit_cache


def _compiler_params(n_parallel_axes):
    return pltpu.CompilerParams(
        dimension_semantics=("parallel",) * n_parallel_axes,
        vmem_limit_bytes=_vmem_limit_bytes(),
    )


def _round_up(x, m):
    return (x + m - 1) // m * m


def _row_align(dtype):
    # sublane alignment for the second-to-last block dim: 8 (f32) / 16 (bf16).
    return {4: 8, 2: 16, 1: 32}.get(jnp.dtype(dtype).itemsize, 8)


# --------------------------------------------------------------------------- #
# Fused LayerNorm + matmul (+ bias, optional GELU)
# --------------------------------------------------------------------------- #
def _ln_matmul_kernel(x_ref, g_ref, b_ref, w_ref, bias_ref, o_ref, *,
                      eps, activation, compute_dtype):
    # LayerNorm on the (tm, H) row tile in f32; hides under the MXU slot.
    x = x_ref[...].astype(jnp.float32)
    mean = jnp.mean(x, axis=-1, keepdims=True)
    xc = x - mean
    var = jnp.mean(xc * xc, axis=-1, keepdims=True)
    y = xc * jax.lax.rsqrt(var + eps)
    y = y * g_ref[...].astype(jnp.float32) + b_ref[...].astype(jnp.float32)
    acc = jnp.dot(y.astype(compute_dtype), w_ref[...],
                  preferred_element_type=jnp.float32)
    acc = acc + bias_ref[...]                      # bias stays f32
    if activation == "gelu":
        acc = jax.nn.gelu(acc, approximate=True)
    o_ref[...] = acc.astype(o_ref.dtype)


def _ln_matmul(xp, gamma, beta, w, b, *, eps, activation, compute_dtype,
               out_dtype, tm_eff):
    """out = act(LayerNorm(xp) @ w + b).  xp pre-padded: rows % tm_eff == 0."""
    Mp, H = xp.shape
    Hw, N = w.shape
    assert Hw == H and Mp % tm_eff == 0
    cd = jnp.dtype(compute_dtype)
    out_dtype = jnp.dtype(out_dtype)

    cost = pl.CostEstimate(
        flops=2 * Mp * H * N,
        transcendentals=Mp * N if activation == "gelu" else 0,
        bytes_accessed=(Mp * H * xp.dtype.itemsize + H * N * cd.itemsize
                        + N * 4 + Mp * N * out_dtype.itemsize),
    )
    kernel = functools.partial(_ln_matmul_kernel, eps=eps, activation=activation,
                               compute_dtype=cd)
    return pl.pallas_call(
        kernel,
        out_shape=jax.ShapeDtypeStruct((Mp, N), out_dtype),
        grid_spec=pltpu.PrefetchScalarGridSpec(
            num_scalar_prefetch=0,
            grid=(Mp // tm_eff,),
            in_specs=[
                pl.BlockSpec((tm_eff, H), lambda i: (i, 0)),   # activation tile
                pl.BlockSpec((1, H), lambda i: (0, 0)),        # LN gamma
                pl.BlockSpec((1, H), lambda i: (0, 0)),        # LN beta
                pl.BlockSpec((H, N), lambda i: (0, 0)),        # resident weight
                pl.BlockSpec((1, N), lambda i: (0, 0)),        # bias (f32)
            ],
            out_specs=pl.BlockSpec((tm_eff, N), lambda i: (i, 0)),
        ),
        compiler_params=_compiler_params(1),
        cost_estimate=cost,
    )(xp, gamma.reshape(1, H), beta.reshape(1, H),
      w.astype(cd), b.reshape(1, N).astype(jnp.float32))


# --------------------------------------------------------------------------- #
# Fused matmul + bias + residual (residual added in f32 epilogue)
# --------------------------------------------------------------------------- #
def _matmul_residual_kernel(x_ref, w_ref, bias_ref, res_ref, o_ref):
    acc = jnp.dot(x_ref[...], w_ref[...], preferred_element_type=jnp.float32)
    acc = acc + bias_ref[...]
    acc = acc + res_ref[...].astype(jnp.float32)   # residual kept in its own dtype
    o_ref[...] = acc.astype(o_ref.dtype)


def _matmul_residual(xp, w, b, resp, *, compute_dtype, out_dtype, tm_eff):
    """out = xp @ w + b + resp.  xp/resp pre-padded: rows % tm_eff == 0."""
    Mp, K = xp.shape
    Kw, N = w.shape
    assert Kw == K and resp.shape == (Mp, N) and Mp % tm_eff == 0
    cd = jnp.dtype(compute_dtype)
    out_dtype = jnp.dtype(out_dtype)

    cost = pl.CostEstimate(
        flops=2 * Mp * K * N,
        transcendentals=0,
        bytes_accessed=(Mp * K * cd.itemsize + K * N * cd.itemsize + N * 4
                        + Mp * N * resp.dtype.itemsize
                        + Mp * N * out_dtype.itemsize),
    )
    return pl.pallas_call(
        _matmul_residual_kernel,
        out_shape=jax.ShapeDtypeStruct((Mp, N), out_dtype),
        grid_spec=pltpu.PrefetchScalarGridSpec(
            num_scalar_prefetch=0,
            grid=(Mp // tm_eff,),
            in_specs=[
                pl.BlockSpec((tm_eff, K), lambda i: (i, 0)),   # activation tile
                pl.BlockSpec((K, N), lambda i: (0, 0)),        # resident weight
                pl.BlockSpec((1, N), lambda i: (0, 0)),        # bias (f32)
                pl.BlockSpec((tm_eff, N), lambda i: (i, 0)),   # residual (f32)
            ],
            out_specs=pl.BlockSpec((tm_eff, N), lambda i: (i, 0)),
        ),
        compiler_params=_compiler_params(1),
        cost_estimate=cost,
    )(xp.astype(cd), w.astype(cd), b.reshape(1, N).astype(jnp.float32), resp)


# --------------------------------------------------------------------------- #
# Self-attention core: one batch per grid step, heads sliced inside the kernel
# --------------------------------------------------------------------------- #
def _attention_kernel(qkv_ref, o_ref, *, num_heads, head_dim, scale):
    H = num_heads * head_dim
    in_dtype = qkv_ref.dtype
    ctx_heads = []
    # TODO(synk): flash-style KV-tiled formulation before scaling S.
    for h in range(num_heads):
        lo = h * head_dim
        hi = lo + head_dim
        q = qkv_ref[:, lo:hi]                       # (S, D)
        k = qkv_ref[:, H + lo:H + hi]
        v = qkv_ref[:, 2 * H + lo:2 * H + hi]
        # fold 1/sqrt(D) into q (S*D multiplies instead of S*S on the scores)
        qs = (q.astype(jnp.float32) * scale).astype(in_dtype)
        s = jax.lax.dot_general(qs, k, (((1,), (1,)), ((), ())),
                                preferred_element_type=jnp.float32)   # (S, S)
        m = jnp.max(s, axis=-1, keepdims=True)
        p = jnp.exp(s - m)
        # softmax divide -> EUP reciprocal (effectively free slot)
        p = p * pl.reciprocal(jnp.sum(p, axis=-1, keepdims=True), approx=True)
        # attention-probs dropout is identity in eval mode; head_mask unsupported.
        ctx_heads.append(jnp.dot(p.astype(v.dtype), v,
                                 preferred_element_type=jnp.float32))
    # single lane-dense (S, H) store
    o_ref[...] = jnp.concatenate(ctx_heads, axis=-1).astype(o_ref.dtype)


def _attention(qkv, *, num_heads, out_dtype):
    """qkv: (B, S, 3H) with [q | k | v] concatenated along the last dim."""
    B, S, threeH = qkv.shape
    H = threeH // 3
    D = H // num_heads
    out_dtype = jnp.dtype(out_dtype)
    scale = 1.0 / math.sqrt(D)

    cost = pl.CostEstimate(
        flops=4 * B * num_heads * S * S * D,
        transcendentals=B * num_heads * S * S,
        bytes_accessed=B * S * (threeH * qkv.dtype.itemsize
                                + H * out_dtype.itemsize),
    )
    return pl.pallas_call(
        functools.partial(_attention_kernel, num_heads=num_heads, head_dim=D,
                          scale=scale),
        out_shape=jax.ShapeDtypeStruct((B, S, H), out_dtype),
        grid_spec=pltpu.PrefetchScalarGridSpec(
            num_scalar_prefetch=0,
            grid=(B,),
            in_specs=[pl.BlockSpec((None, S, threeH), lambda b: (b, 0, 0))],
            out_specs=pl.BlockSpec((None, S, H), lambda b: (b, 0, 0)),
        ),
        compiler_params=_compiler_params(1),
        cost_estimate=cost,
    )(qkv)


# --------------------------------------------------------------------------- #
# Full VideoMAELayer forward (eval mode)
# --------------------------------------------------------------------------- #
def videomae_layer(x, params, *, num_heads, eps=1e-12, tm=512, compute_dtype=None):
    """x: (B, S, H); params hold pre-transposed (in, out) weights, biases, LN params."""
    B, S, H = x.shape
    assert H % num_heads == 0
    M = B * S
    cd = jnp.dtype(compute_dtype or x.dtype)

    # Row-tile selection hoisted to the layer level; pad once at entry.
    align = max(_row_align(x.dtype), _row_align(cd))
    Mp0 = _round_up(M, align)
    tm_eff = min(tm, Mp0)
    # Give megacore (v7x, 2 TCs) at least two parallel grid steps when there is
    # enough work to be worth splitting.
    if Mp0 // tm_eff < 2 and Mp0 >= 256:
        tm_eff = _round_up(pl.cdiv(Mp0, 2), align)
    Mp = _round_up(M, tm_eff)

    x2d = x.reshape(M, H)
    xp = jnp.pad(x2d, ((0, Mp - M), (0, 0))) if Mp != M else x2d

    # Fused QKV weight (H, 3H); key bias is zero in the reference module.
    wqkv = jnp.concatenate([params["wq"], params["wk"], params["wv"]], axis=1)
    bqkv = jnp.concatenate(
        [params["bq"], jnp.zeros((H,), params["bq"].dtype), params["bv"]])

    # layernorm_before fused into the single QKV projection.
    qkv = _ln_matmul(xp, params["ln1_g"], params["ln1_b"], wqkv, bqkv,
                     eps=eps, activation=None, compute_dtype=cd,
                     out_dtype=cd, tm_eff=tm_eff)

    qkv_b = (qkv[:M] if Mp != M else qkv).reshape(B, S, 3 * H)
    ctx = _attention(qkv_b, num_heads=num_heads, out_dtype=cd)
    ctx2d = ctx.reshape(M, H)
    ctxp = jnp.pad(ctx2d, ((0, Mp - M), (0, 0))) if Mp != M else ctx2d

    # Self-output dense fused with the first residual (added in VideoMAELayer).
    hidden = _matmul_residual(ctxp, params["wo"], params["bo"], xp,
                              compute_dtype=cd, out_dtype=x.dtype, tm_eff=tm_eff)

    # layernorm_after fused into the intermediate dense (+ GELU).
    inter = _ln_matmul(hidden, params["ln2_g"], params["ln2_b"], params["wi"],
                       params["bi"], eps=eps, activation="gelu",
                       compute_dtype=cd, out_dtype=cd, tm_eff=tm_eff)

    # Output dense fused with the second residual.
    outp = _matmul_residual(inter, params["wd"], params["bd"], hidden,
                            compute_dtype=cd, out_dtype=x.dtype, tm_eff=tm_eff)
    out = outp[:M] if Mp != M else outp
    return out.reshape(B, S, H)


# --------------------------------------------------------------------------- #
# Pure-JAX reference (f32, highest precision)
# --------------------------------------------------------------------------- #
def videomae_layer_reference(x, params, *, num_heads, eps):
    hp = jax.lax.Precision.HIGHEST

    def ln(v, g, b):
        m = jnp.mean(v, axis=-1, keepdims=True)
        var = jnp.mean(jnp.square(v - m), axis=-1, keepdims=True)
        return (v - m) / jnp.sqrt(var + eps) * g + b

    B, S, H = x.shape
    D = H // num_heads
    h1 = ln(x, params["ln1_g"], params["ln1_b"])
    q = jnp.einsum("bsh,hk->bsk", h1, params["wq"], precision=hp) + params["bq"]
    k = jnp.einsum("bsh,hk->bsk", h1, params["wk"], precision=hp)
    v = jnp.einsum("bsh,hk->bsk", h1, params["wv"], precision=hp) + params["bv"]

    def to_heads(t):
        return t.reshape(B, S, num_heads, D).transpose(0, 2, 1, 3)

    qh, kh, vh = to_heads(q), to_heads(k), to_heads(v)
    scores = jnp.einsum("bhqd,bhkd->bhqk", qh, kh, precision=hp) / math.sqrt(D)
    probs = jax.nn.softmax(scores, axis=-1)
    ctx = jnp.einsum("bhqk,bhkd->bhqd", probs, vh, precision=hp)
    ctx = ctx.transpose(0, 2, 1, 3).reshape(B, S, H)
    attn_out = jnp.einsum("bsh,hk->bsk", ctx, params["wo"], precision=hp) + params["bo"]
    hidden = attn_out + x
    h2 = ln(hidden, params["ln2_g"], params["ln2_b"])
    inter = jax.nn.gelu(
        jnp.einsum("bsh,hi->bsi", h2, params["wi"], precision=hp) + params["bi"],
        approximate=True)
    out = jnp.einsum("bsi,ih->bsh", inter, params["wd"], precision=hp) + params["bd"] + hidden
    return out


if __name__ == "__main__":
    B, S = 2, 8
    hidden_size = 128          # lane-dense (multiple of 128)
    num_heads = 4              # head_dim = 32
    intermediate_size = 512
    eps = 1e-12

    key = jax.random.PRNGKey(0)
    ks = jax.random.split(key, 16)

    x = jax.random.normal(ks[0], (B, S, hidden_size), dtype=jnp.float32)

    def linear_w(k, fan_in, fan_out):
        bound = 1.0 / math.sqrt(fan_in)
        return jax.random.uniform(k, (fan_in, fan_out), minval=-bound, maxval=bound,
                                  dtype=jnp.float32)

    def linear_b(k, fan_in, fan_out):
        bound = 1.0 / math.sqrt(fan_in)
        return jax.random.uniform(k, (fan_out,), minval=-bound, maxval=bound,
                                  dtype=jnp.float32)

    params = {
        "ln1_g": 1.0 + 0.1 * jax.random.normal(ks[1], (hidden_size,), dtype=jnp.float32),
        "ln1_b": 0.1 * jax.random.normal(ks[2], (hidden_size,), dtype=jnp.float32),
        "wq": linear_w(ks[3], hidden_size, hidden_size),
        "bq": 0.02 * jax.random.normal(ks[4], (hidden_size,), dtype=jnp.float32),
        "wk": linear_w(ks[5], hidden_size, hidden_size),
        "wv": linear_w(ks[6], hidden_size, hidden_size),
        "bv": 0.02 * jax.random.normal(ks[7], (hidden_size,), dtype=jnp.float32),
        "wo": linear_w(ks[8], hidden_size, hidden_size),
        "bo": linear_b(ks[9], hidden_size, hidden_size),
        "ln2_g": 1.0 + 0.1 * jax.random.normal(ks[10], (hidden_size,), dtype=jnp.float32),
        "ln2_b": 0.1 * jax.random.normal(ks[11], (hidden_size,), dtype=jnp.float32),
        "wi": linear_w(ks[12], hidden_size, intermediate_size),
        "bi": linear_b(ks[13], hidden_size, intermediate_size),
        "wd": linear_w(ks[14], intermediate_size, hidden_size),
        "bd": linear_b(ks[15], intermediate_size, hidden_size),
    }

    ref = videomae_layer_reference(x, params, num_heads=num_heads, eps=eps)

    # f32 compute path: validates numerics.
    out_f32 = videomae_layer(x, params, num_heads=num_heads, eps=eps,
                             compute_dtype=jnp.float32)
    out_f32 = jax.block_until_ready(out_f32)
    assert out_f32.shape == (B, S, hidden_size)
    assert jnp.allclose(out_f32, ref, atol=2e-2, rtol=2e-2), \
        "f32 kernel mismatch vs reference"

    # bf16 MXU-operand path (production default), f32 accumulate + f32 residuals.
    out_bf16 = videomae_layer(x, params, num_heads=num_heads, eps=eps,
                              compute_dtype=jnp.bfloat16)
    out_bf16 = jax.block_until_ready(out_bf16)
    assert out_bf16.shape == (B, S, hidden_size)
    assert jnp.allclose(out_bf16.astype(jnp.float32), ref, atol=7.5e-2, rtol=5e-2), \
        "bf16 kernel mismatch vs reference"

    print("KERNEL_OK")
</pallas_src>

<mosaic_0001>
module attributes {stable_mosaic.version = 11 : i64} {
  func.func @_ln_matmul_kernel(%arg0: i32, %arg1: memref<16x128xf32, #tpu.memory_space<vmem>>, %arg2: memref<1x128xf32, #tpu.memory_space<vmem>>, %arg3: memref<1x128xf32, #tpu.memory_space<vmem>>, %arg4: memref<128x384xf32, #tpu.memory_space<vmem>>, %arg5: memref<1x384xf32, #tpu.memory_space<vmem>>, %arg6: memref<16x384xf32, #tpu.memory_space<vmem>>) attributes {dimension_semantics = [#tpu.dimension_semantics<parallel>], iteration_bounds = array<i64: 1>, scalar_prefetch = 0 : i64, scratch_operands = 0 : i64, tpu.core_type = #tpu.core_type<tc>, window_params = [{transform_indices = @transform_0, window_bounds = array<i64: 16, 128>}, {pipeline_mode = #tpu.pipeline_mode<synchronous>, transform_indices = @transform_1, window_bounds = array<i64: 1, 128>}, {pipeline_mode = #tpu.pipeline_mode<synchronous>, transform_indices = @transform_2, window_bounds = array<i64: 1, 128>}, {pipeline_mode = #tpu.pipeline_mode<synchronous>, transform_indices = @transform_3, window_bounds = array<i64: 128, 384>}, {pipeline_mode = #tpu.pipeline_mode<synchronous>, transform_indices = @transform_4, window_bounds = array<i64: 1, 384>}, {transform_indices = @transform_5, window_bounds = array<i64: 16, 384>}]} {
    %c0 = arith.constant 0 : index
    %c0_0 = arith.constant 0 : index
    %0 = vector.load %arg1[%c0, %c0_0] : memref<16x128xf32, #tpu.memory_space<vmem>>, vector<16x128xf32>
    %cst = arith.constant dense<0.000000e+00> : vector<16xf32>
    %1 = vector.multi_reduction <add>, %0, %cst [1] : vector<16x128xf32> to vector<16xf32>
    %2 = vector.shape_cast %1 : vector<16xf32> to vector<16x1xf32>
    %cst_1 = arith.constant 1.280000e+02 : f32
    %3 = vector.broadcast %cst_1 : f32 to vector<16x1xf32>
    %4 = arith.divf %2, %3 : vector<16x1xf32>
    %5 = vector.broadcast %4 : vector<16x1xf32> to vector<16x128xf32>
    %6 = arith.subf %0, %5 : vector<16x128xf32>
    %7 = arith.mulf %6, %6 : vector<16x128xf32>
    %cst_2 = arith.constant dense<0.000000e+00> : vector<16xf32>
    %8 = vector.multi_reduction <add>, %7, %cst_2 [1] : vector<16x128xf32> to vector<16xf32>
    %9 = vector.shape_cast %8 : vector<16xf32> to vector<16x1xf32>
    %cst_3 = arith.constant 1.280000e+02 : f32
    %10 = vector.broadcast %cst_3 : f32 to vector<16x1xf32>
    %11 = arith.divf %9, %10 : vector<16x1xf32>
    %cst_4 = arith.constant 9.99999996E-13 : f32
    %12 = vector.broadcast %cst_4 : f32 to vector<16x1xf32>
    %13 = arith.addf %11, %12 : vector<16x1xf32>
    %14 = math.rsqrt %13 : vector<16x1xf32>
    %15 = vector.broadcast %14 : vector<16x1xf32> to vector<16x128xf32>
    %16 = arith.mulf %6, %15 : vector<16x128xf32>
    %c0_5 = arith.constant 0 : index
    %c0_6 = arith.constant 0 : index
    %17 = vector.load %arg2[%c0_5, %c0_6] : memref<1x128xf32, #tpu.memory_space<vmem>>, vector<1x128xf32>
    %18 = vector.broadcast %17 : vector<1x128xf32> to vector<16x128xf32>
    %19 = arith.mulf %16, %18 : vector<16x128xf32>
    %c0_7 = arith.constant 0 : index
    %c0_8 = arith.constant 0 : index
    %20 = vector.load %arg3[%c0_7, %c0_8] : memref<1x128xf32, #tpu.memory_space<vmem>>, vector<1x128xf32>
    %21 = vector.broadcast %20 : vector<1x128xf32> to vector<16x128xf32>
    %22 = arith.addf %19, %21 : vector<16x128xf32>
    %c0_9 = arith.constant 0 : index
    %c0_10 = arith.constant 0 : index
    %23 = vector.load %arg4[%c0_9, %c0_10] : memref<128x384xf32, #tpu.memory_space<vmem>>, vector<128x384xf32>
    %cst_11 = arith.constant dense<0.000000e+00> : vector<16x384xf32>
    %24 = tpu.matmul %22, %23, %cst_11 {dimension_numbers = #tpu.dot_dimension_numbers<[1], [0], [0], [1], [0, 0, 1, 1], [], []>} : vector<16x128xf32>, vector<128x384xf32>, vector<16x384xf32> -> vector<16x384xf32>
    %c0_12 = arith.constant 0 : index
    %c0_13 = arith.constant 0 : index
    %25 = vector.load %arg5[%c0_12, %c0_13] : memref<1x384xf32, #tpu.memory_space<vmem>>, vector<1x384xf32>
    %26 = vector.broadcast %25 : vector<1x384xf32> to vector<16x384xf32>
    %27 = arith.addf %24, %26 : vector<16x384xf32>
    %c0_14 = arith.constant 0 : index
    %c0_15 = arith.constant 0 : index
    %28 = vector.load %arg6[%c0_14, %c0_15] : memref<16x384xf32, #tpu.memory_space<vmem>>, vector<16x384xf32>
    tpu.vector_store %arg6[%c0_14, %c0_15], %27 {strides = array<i32>} : memref<16x384xf32, #tpu.memory_space<vmem>>, vector<16x384xf32>,
    return
  }
  func.func @transform_0(%arg0: i32) -> (i32, i32) {
    %c0_i32 = arith.constant 0 : i32
    %c0_i32_0 = arith.constant 0 : i32
    return %arg0, %c0_i32 : i32, i32
  }
  func.func @transform_1(%arg0: i32) -> (i32, i32) {
    %c0_i32 = arith.constant 0 : i32
    %c0_i32_0 = arith.constant 0 : i32
    %c0_i32_1 = arith.constant 0 : i32
    return %c0_i32, %c0_i32_0 : i32, i32
  }
  func.func @transform_2(%arg0: i32) -> (i32, i32) {
    %c0_i32 = arith.constant 0 : i32
    %c0_i32_0 = arith.constant 0 : i32
    %c0_i32_1 = arith.constant 0 : i32
    return %c0_i32, %c0_i32_0 : i32, i32
  }
  func.func @transform_3(%arg0: i32) -> (i32, i32) {
    %c0_i32 = arith.constant 0 : i32
    %c0_i32_0 = arith.constant 0 : i32
    %c0_i32_1 = arith.constant 0 : i32
    return %c0_i32, %c0_i32_0 : i32, i32
  }
  func.func @transform_4(%arg0: i32) -> (i32, i32) {
    %c0_i32 = arith.constant 0 : i32
    %c0_i32_0 = arith.constant 0 : i32
    %c0_i32_1 = arith.constant 0 : i32
    return %c0_i32, %c0_i32_0 : i32, i32
  }
  func.func @transform_5(%arg0: i32) -> (i32, i32) {
    %c0_i32 = arith.constant 0 : i32
    %c0_i32_0 = arith.constant 0 : i32
    return %arg0, %c0_i32 : i32, i32
  }
}

</mosaic_0001>

<bundles_post_ra>
// kernel: tpu_custom_call.1
= control target key start
LH: loop header
LB: loop body
LE: loop exit
PB: predicated region body
PF: predicated region fallthrough
CT: control target
= control target key end

     0   :  { %10 = vsyncpa [#allocation3], 0  ;;  %s635_s0 = inlined_call_operand.hbm [shape: f32[16,128], index: 0, kind: input, shape index: {}]   ;;  %s636_s1 = inlined_call_operand.vmem [shape: f32[1,128], index: 1, kind: input, shape index: {}]   ;;  %s637_s2 = inlined_call_operand.vmem [shape: f32[1,128], index: 2, kind: input, shape index: {}]   ;;  %s638_s3 = inlined_call_operand.hbm [shape: f32[128,384], index: 3, kind: input, shape index: {}]   ;;  %s639_s4 = inlined_call_operand.vmem [shape: f32[1,384], index: 4, kind: input, shape index: {}]   ;;  %s640_s5 = inlined_call_operand.hbm [shape: f32[16,384], index: 5, kind: output, shape index: {}]  }
   0x1   :  { %11 = vsyncpa [#allocation6], 0 }
   0x2   :  { %12 = vsyncpa [#allocation4], 0  ;;  %s536_s18 = smov [#allocation2]   ;;  %s464_s22 = scalar_lea.hbm %s635_s0, 256 }
   0x3   :  { %s18_s19 = sshll.u32 %s536_s18, 4  ;;  %p465_p0 = scmp.ne.s32.totalorder %s635_s0, %s464_s22  ;;  %s19_s19 = int_to_ptr.vmem [resolvable:$true] %s18_s19 }
   0x4   :  { %p468_p1 = scmp.lt.u32.totalorder %s464_s22, %s635_s0 }
   0x6   :  { %p470_p2 = pnand %p468_p1, %p465_p0 }
   0x8   :  { %473 = shalt.err (!%p470_p2)
}
   0x9   :  { %s474_s27 = scalar_lea.vmem %s19_s19, 256  ;;  %p479_p4 = scmp.lt.s32.totalorder %s19_s19, %s19_s19 }
   0xa   :  { %p475_p3 = scmp.ne.s32.totalorder %s19_s19, %s474_s27  ;;  %p480_p5 = scmp.lt.s32.totalorder %s474_s27, %s474_s27 }
   0xc   :  { %p481_p6 = por %p480_p5, %p479_p4 }
   0xe   :  { %p482_p7 = pnand %p481_p6, %p475_p3 }
  0x10   :  { %485 = shalt.err (!%p482_p7)
}
  0x11   :  { %s537_s28 = smov 128   ;;  %s538_s29 = smov 8  }
  0x12   :  { %24 = dma.hbm_to_vmem [thread:$0]  %s635_s0, 256, %s19_s19, [#allocation3], %s537_s28, %s537_s28, %s538_s29  }
  0x13   :  { %s539_s7 = smov [#allocation5]   ;;  %s486_s11 = scalar_lea.hbm %s638_s3, 6144 }
  0x14   :  { %s34_s8 = sshll.u32 %s539_s7, 4  ;;  %p487_p8 = scmp.ne.s32.totalorder %s638_s3, %s486_s11  ;;  %s35_s8 = int_to_ptr.vmem [resolvable:$true] %s34_s8 }
  0x15   :  { %p490_p9 = scmp.lt.u32.totalorder %s486_s11, %s638_s3 }
  0x17   :  { %p492_p10 = pnand %p490_p9, %p487_p8 }
  0x19   :  { %495 = shalt.err (!%p492_p10)
}
  0x1a   :  { %s496_s16 = scalar_lea.vmem %s35_s8, 6144  ;;  %p501_p12 = scmp.lt.s32.totalorder %s35_s8, %s35_s8 }
  0x1b   :  { %p497_p11 = scmp.ne.s32.totalorder %s35_s8, %s496_s16  ;;  %p502_p13 = scmp.lt.s32.totalorder %s496_s16, %s496_s16 }
  0x1d   :  { %p503_p0 = por %p502_p13, %p501_p12 }
  0x1f   :  { %p504_p1 = pnand %p503_p0, %p497_p11 }
  0x21   :  { %507 = shalt.err (!%p504_p1)
}
  0x22   :  { %s540_s0 = smov 384   ;;  %s541_s17 = smov 24  }
  0x23   :  { %40 = dma.hbm_to_vmem [thread:$0]  %s638_s3, 6144, %s35_s8, [#allocation6], %s540_s0, %s540_s0, %s541_s17  }
  0x24   :  { %530 = dma.done.wait [#allocation3], 256  }
  0x25   :  { %531 = vsyncadd [#allocation3], 4294967040 }
  0x26   :  { %532 = dma.done.wait [#allocation6], 6144  }
  0x27   :  { %533 = vsyncadd [#allocation6], 4294961152  ;;  %v49_v0 = vld [vmem:[#allocation2] sm:$0xff]  ;;  %v50_v1 = vld [vmem:[#allocation2 + $0x8] sm:$0xff] }
  0x28   :  { %51 = vadd.xlane.f32.xlu0 %v49_v0  ;;  %v93_v2 = vld [vmem:[#allocation5 + $0x8] sm:$0xff]  ;;  %v96_v3 = vld [vmem:[#allocation5 + $0x20] sm:$0xff]  ;;  %v95_v6 = vld [vmem:[#allocation5 + $0x18] sm:$0xff] }
  0x29   :  { %v92_v4 = vld [vmem:[#allocation5] sm:$0xff]  ;;  %v388_v5 = vpack.c.bf16 %v96_v3, %v93_v2  ;;  %v99_v7 = vld [vmem:[#allocation5 + $0x38] sm:$0xff]  ;;  %v102_v8 = vld [vmem:[#allocation5 + $0x50] sm:$0xff] }
  0x2a   :  { %v390_v9 = vpack.c.bf16 %v95_v6, %v92_v4  ;;  %v392_v10 = vpack.c.bf16 %v102_v8, %v99_v7  ;;  %v94_v11 = vld [vmem:[#allocation5 + $0x10] sm:$0xff]  ;;  %v97_v12 = vld [vmem:[#allocation5 + $0x28] sm:$0xff]  ;;  %v108_v17 = vld [vmem:[#allocation5 + $0x80] sm:$0xff]  ;;  %v542_v4 = vmov 0.0  }
  0x2b   :  { %v98_v13 = vld [vmem:[#allocation5 + $0x30] sm:$0xff]  ;;  %389 = vmatprep.subr.bf16.mxu0 %v388_v5  ;;  %v420_v14 = vpack.c.bf16 %v97_v12, %v94_v11  ;;  %v101_v15 = vld [vmem:[#allocation5 + $0x48] sm:$0xff]  ;;  %v100_v19 = vld [vmem:[#allocation5 + $0x40] sm:$0xff]  ;;  %221 = vmatprep.mubr.f32.mxu0 %v542_v4 }
  0x2c   :  { %53 = vadd.xlane.f32.xlu0 %v50_v1  ;;  %v105_v16 = vld [vmem:[#allocation5 + $0x68] sm:$0xff]  ;;  %391 = vmatpush1.bf16.msra.mxu0 %v390_v9  ;;  %v394_v18 = vpack.c.bf16 %v101_v15, %v98_v13  ;;  %v103_v20 = vld [vmem:[#allocation5 + $0x58] sm:$0xff]  ;;  %v104_v23 = vld [vmem:[#allocation5 + $0x60] sm:$0xff] }
  0x2d   :  { %393 = vmatprep.subr.bf16.mxu0 %v392_v10  ;;  %421 = vmatprep.subr.bf16.mxu1 %v420_v14  ;;  %v396_v21 = vpack.c.bf16 %v108_v17, %v105_v16  ;;  %v424_v22 = vpack.c.bf16 %v103_v20, %v100_v19  ;;  %v107_v24 = vld [vmem:[#allocation5 + $0x78] sm:$0xff]  ;;  %v114_v35 = vld [vmem:[#allocation5 + $0xb0] sm:$0xff]  ;;  %v109_v38 = vld [vmem:[#allocation5 + $0x88] sm:$0xff] }
  0x2e   :  { %423 = vmatpush3.bf16.msra.mxu1 %v420_v14  ;;  %v398_v25 = vpack.c.bf16 %v107_v24, %v104_v23  ;;  %v111_v34 = vld [vmem:[#allocation5 + $0x98] sm:$0xff]  ;;  %v106_v36 = vld [vmem:[#allocation5 + $0x70] sm:$0xff]  ;;  %v113_v40 = vld [vmem:[#allocation5 + $0xa8] sm:$0xff] }
  0x2f   :  { %425 = vmatprep.subr.bf16.mxu1 %v424_v22  ;;  %v400_v37 = vpack.c.bf16 %v114_v35, %v111_v34  ;;  %v110_v39 = vld [vmem:[#allocation5 + $0x90] sm:$0xff]  ;;  %v428_v41 = vpack.c.bf16 %v109_v38, %v106_v36  ;;  %v117_v43 = vld [vmem:[#allocation5 + $0xc8] sm:$0xff]  ;;  %v120_v44 = vld [vmem:[#allocation5 + $0xe0] sm:$0xff] }
  0x30   :  { %395 = vmatpush1.bf16.msra.mxu0 %v394_v18  ;;  %v402_v42 = vpack.c.bf16 %v113_v40, %v110_v39  ;;  %v112_v45 = vld [vmem:[#allocation5 + $0xa0] sm:$0xff]  ;;  %v404_v46 = vpack.c.bf16 %v120_v44, %v117_v43  ;;  %v115_v47 = vld [vmem:[#allocation5 + $0xb8] sm:$0xff]  ;;  %v126_v53 = vld [vmem:[#allocation5 + $0x110] sm:$0xff] }
  0x31   :  { %397 = vmatprep.subr.bf16.mxu0 %v396_v21  ;;  %v116_v48 = vld [vmem:[#allocation5 + $0xc0] sm:$0xff]  ;;  %v119_v49 = vld [vmem:[#allocation5 + $0xd8] sm:$0xff]  ;;  %v432_v50 = vpack.c.bf16 %v115_v47, %v112_v45  ;;  %v118_v54 = vld [vmem:[#allocation5 + $0xd0] sm:$0xff] }
  0x32   :  { %427 = vmatpush3.bf16.msra.mxu1 %v424_v22  ;;  %v406_v51 = vpack.c.bf16 %v119_v49, %v116_v48  ;;  %v123_v52 = vld [vmem:[#allocation5 + $0xf8] sm:$0xff]  ;;  %v121_v56 = vld [vmem:[#allocation5 + $0xe8] sm:$0xff]  ;;  %v122_v57 = vld [vmem:[#allocation5 + $0xf0] sm:$0xff] }
  0x33   :  { %429 = vmatprep.subr.bf16.mxu1 %v428_v41  ;;  %v408_v55 = vpack.c.bf16 %v126_v53, %v123_v52  ;;  %v125_v58 = vld [vmem:[#allocation5 + $0x108] sm:$0xff]  ;;  %v436_v59 = vpack.c.bf16 %v121_v56, %v118_v54  ;;  %v132_v62 = vld [vmem:[#allocation5 + $0x140] sm:$0xff]  ;;  %v131_v3 = vld [vmem:[#allocation5 + $0x138] sm:$0xff] }
  0x34   :  { %399 = vmatpush1.bf16.msra.mxu0 %v398_v25  ;;  %v410_v60 = vpack.c.bf16 %v125_v58, %v122_v57  ;;  %v129_v61 = vld [vmem:[#allocation5 + $0x128] sm:$0xff]  ;;  %v124_v63 = vld [vmem:[#allocation5 + $0x100] sm:$0xff]  ;;  %v135_v7 = vld [vmem:[#allocation5 + $0x158] sm:$0xff] }
  0x35   :  { %401 = vmatprep.subr.bf16.mxu0 %v400_v37  ;;  %v128_v2 = vld [vmem:[#allocation5 + $0x120] sm:$0xff]  ;;  %v138_v8 = vld [vmem:[#allocation5 + $0x170] sm:$0xff]  ;;  %v133_v11 = vld [vmem:[#allocation5 + $0x148] sm:$0xff]  ;;  %v142_v37 = vlaneseq }
  0x36   :  { %431 = vmatpush3.bf16.msra.mxu1 %v428_v41  ;;  %v414_v6 = vpack.c.bf16 %v131_v3, %v128_v2  ;;  %v130_v9 = vld [vmem:[#allocation5 + $0x130] sm:$0xff]  ;;  %v416_v10 = vpack.c.bf16 %v138_v8, %v135_v7  ;;  %v137_v13 = vld [vmem:[#allocation5 + $0x168] sm:$0xff]  ;;  %v136_v16 = vld [vmem:[#allocation5 + $0x160] sm:$0xff] }
  0x37   :  { %433 = vmatprep.subr.bf16.mxu1 %v432_v50  ;;  %v134_v12 = vld [vmem:[#allocation5 + $0x150] sm:$0xff]  ;;  %v444_v14 = vpack.c.bf16 %v133_v11, %v130_v9  ;;  %v139_v17 = vld [vmem:[#allocation5 + $0x178] sm:$0xff]  ;;  %v143_v38 = vshrl.u32 %v142_v37, 7 }
  0x38   :  { %403 = vmatpush1.bf16.msra.mxu0 %v402_v42  ;;  %v418_v15 = vpack.c.bf16 %v137_v13, %v134_v12  ;;  %v448_v18 = vpack.c.bf16 %v139_v17, %v136_v16 }
  0x39   :  { %405 = vmatprep.subr.bf16.mxu0 %v404_v46  ;;  %v144_v39 = vsub.s32 0, %v143_v38  ;;  %v148_v40 = vsub.s32 1, %v143_v38  ;;  %v152_v42 = vsub.s32 2, %v143_v38 }
  0x3a   :  { %435 = vmatpush3.bf16.msra.mxu1 %v432_v50 }
  0x3b   :  { %437 = vmatprep.subr.bf16.mxu1 %v436_v59 }
  0x3c   :  { %407 = vmatpush1.bf16.msra.mxu0 %v406_v51 }
  0x3d   :  { %409 = vmatprep.subr.bf16.mxu0 %v408_v55 }
  0x3e   :  { %439 = vmatpush3.bf16.msra.mxu1 %v436_v59 }
  0x40   :  { %411 = vmatpush1.bf16.msra.mxu0 %v410_v60 }
  0xb5   :  { %v52_v26 = vpop.xlane.xlu0 %51 }
  0xb6   :  { %v56_v27 = vmul.f32 0.0078125, %v52_v26  ;;  %v333_v26 = vld [vmem:[%s636_s1] ss:$0 sm:$0xff] }
  0xb8   :  { %v601_v28 = vsub.f32 %v49_v0, %v56_v27  ;;  %v412_v0 = vpack.c.bf16 %v132_v62, %v129_v61 }
  0xb9   :  { %v54_v29 = vpop.xlane.xlu0 %53 }
  0xba   :  { %v57_v30 = vmul.f32 0.0078125, %v54_v29  ;;  %v60_v31 = vmul.f32 %v601_v28, %v601_v28  ;;  %413 = vmatprep.subr.bf16.mxu0 %v412_v0  ;;  %v334_v29 = vld [vmem:[%s637_s2] ss:$0 sm:$0xff]  ;;  %s543_s2 = smov [#allocation7]  }
  0xbb   :  { %415 = vmatpush1.bf16.msra.mxu0 %v414_v6  ;;  %s320_s24 = sshll.u32 %s543_s2, 4  ;;  %s321_s24 = int_to_ptr.vmem [resolvable:$true] %s320_s24 }
  0xbc   :  { %v605_v32 = vsub.f32 %v50_v1, %v57_v30  ;;  %62 = vadd.xlane.f32.xlu1 %v60_v31  ;;  %v127_v1 = vld [vmem:[#allocation5 + $0x118] sm:$0xff]  ;;  %417 = vmatprep.subr.bf16.mxu0 %v416_v10  ;;  %p513_p3 = scmp.lt.s32.totalorder %s321_s24, %s321_s24 }
  0xbd   :  { %v440_v5 = vpack.c.bf16 %v127_v1, %v124_v63 }
  0xbe   :  { %v61_v33 = vmul.f32 %v605_v32, %v605_v32 }
  0xbf   :  { %441 = vmatprep.subr.bf16.mxu1 %v440_v5  ;;  %419 = vmatpush1.bf16.msra.mxu0 %v418_v15 }
  0xc0   :  { %64 = vadd.xlane.f32.xlu1 %v61_v33  ;;  %443 = vmatpush3.bf16.msra.mxu1 %v440_v5 }
  0xc1   :  { %445 = vmatprep.subr.bf16.mxu1 %v444_v14 }
  0xc4   :  { %447 = vmatpush3.bf16.msra.mxu1 %v444_v14 }
  0xc5   :  { %449 = vmatprep.subr.bf16.mxu1 %v448_v18 }
  0xc8   :  { %451 = vmatpush3.bf16.msra.mxu1 %v448_v18 }
 0x149   :  { %v63_v19 = vpop.xlane.xlu1 %62 }
 0x14a   :  { %v66_v20 = vmul.f32 0.0078125, %v63_v19 }
 0x14c   :  { %v68_v21 = vadd.f32 1e-12, %v66_v20 }
 0x14d   :  { %v65_v22 = vpop.xlane.xlu1 %64 }
 0x14e   :  { %460 = vrsqrt.f32 %v68_v21  ;;  %v67_v23 = vmul.f32 0.0078125, %v65_v22 }
 0x150   :  { %v69_v24 = vadd.f32 1e-12, %v67_v23 }
 0x152   :  { %462 = vrsqrt.f32 %v69_v24 }
 0x158   :  { %v461_v25 = vpop.eup %460 }
 0x159   :  { %v72_v27 = vmul.f32 %v461_v25, %v601_v28  ;;  %v140_v28 = vld [vmem:[%s639_s4] sm:$0x7]  ;;  %s508_s4 = scalar_lea.vmem %s321_s24, 768 }
 0x15a   :  { %v145_v41 = vrot.slane %v140_v28, %v144_v39  ;;  %v149_v43 = vrot.slane %v140_v28, %v148_v40  ;;  %v153_v46 = vrot.slane %v140_v28, %v152_v42  ;;  %p509_p2 = scmp.ne.s32.totalorder %s321_s24, %s508_s4  ;;  %p514_p4 = scmp.lt.s32.totalorder %s508_s4, %s508_s4 }
 0x15b   :  { %v81_v30 = vmul.f32 %v333_v26, %v72_v27 }
 0x15c   :  { %v463_v31 = vpop.eup %462  ;;  %p515_p5 = por %p514_p4, %p513_p3 }
 0x15d   :  { %v90_v33 = vadd.f32 %v334_v29, %v81_v30  ;;  %v73_v34 = vmul.f32 %v463_v31, %v605_v32 }
 0x15e   :  { %p516_p6 = pnand %p515_p5, %p509_p2 }
 0x15f   :  { %222 = vmatmul.mubr.f32.vlgmr.msra.gmra.mrb[0].mxu0 %v90_v33  ;;  %385 = vmatprep.mubr.f32.mxu1 %v90_v33  ;;  %v82_v35 = vmul.f32 %v333_v26, %v73_v34 }
 0x160   :  { %227 = vmatprep.mubr.f32.mxu0 %v542_v4 }
 0x161   :  { %v91_v36 = vadd.f32 %v334_v29, %v82_v35 }
 0x163   :  { %228 = vmatmul.mubr.f32.gmra.mrb[2].mxu0 %v91_v36  ;;  %386 = vmatmul.mubr.f32.vlgmr.msra.gmra.mrb[0].mxu1 %v91_v36 }
 0x232   :  { %v223_v44 = vpop.f32.mrb[0].mxu0 }
 0x233   :  { %v224_v32 = vadd.f32 %v223_v44, %v145_v41  ;;  %v225_v45 = vpop.f32.mrb[1].mxu0 }
 0x234   :  { %v226_v47 = vadd.f32 %v225_v45, %v149_v43 }
 0x235   :  { %309 = vst [vmem:[#allocation7] sm:$0xff] %v224_v32 }
 0x236   :  { %310 = vst [vmem:[#allocation7 + $0x8] sm:$0xff] %v226_v47  ;;  %v229_v48 = vpop.f32.mrb[2].mxu0  ;;  %v387_v49 = vpop.f32.mrb[0].mxu1 }
 0x237   :  { %v230_v50 = vadd.f32 %v229_v48, %v145_v41  ;;  %v306_v51 = vadd.f32 %v387_v49, %v153_v46  ;;  %v231_v52 = vpop.f32.mrb[3].mxu0  ;;  %v300_v53 = vpop.f32.mrb[1].mxu1 }
 0x238   :  { %v232_v54 = vadd.f32 %v231_v52, %v149_v43  ;;  %v301_v55 = vadd.f32 %v300_v53, %v153_v46 }
 0x239   :  { %312 = vst [vmem:[#allocation7 + $0x18] sm:$0xff] %v230_v50  ;;  %314 = vst [vmem:[#allocation7 + $0x28] sm:$0xff] %v306_v51 }
 0x23a   :  { %313 = vst [vmem:[#allocation7 + $0x20] sm:$0xff] %v232_v54  ;;  %311 = vst [vmem:[#allocation7 + $0x10] sm:$0xff] %v301_v55 }
 0x23b   :  { %519 = shalt.err (!%p516_p6)
}
 0x23c   :  { %s520_s27 = scalar_lea.hbm %s640_s5, 768 }
 0x23d   :  { %p521_p7 = scmp.ne.s32.totalorder %s640_s5, %s520_s27  ;;  %p524_p8 = scmp.lt.u32.totalorder %s520_s27, %s640_s5 }
 0x23f   :  { %p526_p9 = pnand %p524_p8, %p521_p7 }
 0x241   :  { %529 = shalt.err (!%p526_p9)
}
 0x242   :  { %326 = dma.vmem_to_hbm [thread:$0]  %s321_s24, 768, %s640_s5, [#allocation4], %s540_s0, %s540_s0, %s541_s17  }
 0x243   :  { %534 = dma.done.wait [#allocation4], 768  }
 0x244   :  { %535 = vsyncadd [#allocation4], 4294966528 }
 0x245   :  { %330 = vsyncpa [#allocation3], 1 }
 0x246   :  { %331 = vsyncpa [#allocation6], 1 }
 0x247   :  { %332 = vsyncpa [#allocation4], 1 }

</bundles_post_ra>
